<compile_context>
chip_gen: v7x
topology: tpu7x:2x2x1
jax: 0.10.0
libtpu: 0.0.40
codegen_flags: <defaults>
</compile_context>

<pallas_src>
import jax
import jax.numpy as jnp
from jax import lax
from jax.experimental import pallas as pl
from jax.experimental.pallas import tpu as pltpu

INPUT_SIZE = 64
HIDDEN_SIZE = 64
OUTPUT_SIZE = 10 * 10 * 3  # rnn_num_mixture * z_size * 3 = 300


def rnn_fc_kernel(x_ref, h0_ref, wih_ref, whh_ref, b_ref, wfc_ref, bfc_ref,
                  y_ref, hout_ref, xp_scr, hs_scr):
    """One time-chunk of the recurrence + batched projection / FC head.

    x_ref:   (Tc*Bp, D)  time-major chunk, rows = (t, b) flattened
    h0_ref:  (Bp, H)     initial hidden state (used only on the first chunk)
    wih_ref: (D, H)      whh_ref: (H, H)      b_ref: (1, H)  (= b_ih + b_hh)
    wfc_ref: (H, O)      bfc_ref: (1, O)
    y_ref:   (Tc*Bp, O)  output chunk (lane-dense single store)
    hout_ref:(Bp, H)     resident across the grid -> doubles as the h carry
    xp_scr / hs_scr: (Tc*Bp, H) VMEM scratch (input projection / hidden states)
    """
    Bp = h0_ref.shape[0]
    Tc = x_ref.shape[0] // Bp

    # First chunk: seed the resident carry block with h0.
    @pl.when(pl.program_id(0) == 0)
    def _():
        hout_ref[...] = h0_ref[...]

    # Hoisted input projection for the whole chunk: one (Tc*Bp, D)x(D, H)
    # MXU matmul instead of Tc tiny ones on the serial critical path.
    xp_scr[...] = (jnp.dot(x_ref[...], wih_ref[...],
                           preferred_element_type=jnp.float32)
                   + b_ref[...])

    # Serial recurrence; h stays in vregs as the fori_loop carry.
    def step(t, h):
        r = pl.multiple_of(t * Bp, Bp)
        pre = xp_scr[pl.ds(r, Bp), :] + jnp.dot(
            h, whh_ref[...], preferred_element_type=jnp.float32)
        h = jnp.tanh(pre)
        hs_scr[pl.ds(r, Bp), :] = h
        return h

    h_last = lax.fori_loop(0, Tc, step, hout_ref[...], unroll=True)
    hout_ref[...] = h_last

    # Hoisted FC head: one (Tc*Bp, H)x(H, O) matmul + one lane-dense store.
    y_ref[...] = (jnp.dot(hs_scr[...], wfc_ref[...],
                          preferred_element_type=jnp.float32)
                  + bfc_ref[...]).astype(y_ref.dtype)


def _pick_chunk(T, max_chunk=16):
    """Largest divisor of T that is <= max_chunk (unrolled per-chunk loop)."""
    for c in range(min(T, max_chunk), 0, -1):
        if T % c == 0:
            return c
    return T


def rnn_forward(x, hidden, params):
    """x: (B, T, 64) float32, hidden: (1, B, 64) float32."""
    B, T, D = x.shape
    H, O = HIDDEN_SIZE, OUTPUT_SIZE
    Bp = ((max(B, 8) + 7) // 8) * 8          # pad batch to full sublane groups
    Tc = _pick_chunk(T)
    n_chunks = T // Tc

    x_tm = jnp.transpose(x, (1, 0, 2))       # (T, B, D) time-major
    h0 = hidden[0]                           # (B, H)
    if Bp != B:
        x_tm = jnp.pad(x_tm, ((0, 0), (0, Bp - B), (0, 0)))
        h0 = jnp.pad(h0, ((0, Bp - B), (0, 0)))
    x2d = x_tm.reshape(T * Bp, D)            # rows are (t, b) flattened

    y2d, h_out = pl.pallas_call(
        rnn_fc_kernel,
        out_shape=(jax.ShapeDtypeStruct((T * Bp, O), jnp.float32),
                   jax.ShapeDtypeStruct((Bp, H), jnp.float32)),
        grid_spec=pltpu.PrefetchScalarGridSpec(
            num_scalar_prefetch=0,
            grid=(n_chunks,),
            in_specs=[
                pl.BlockSpec((Tc * Bp, D), lambda c: (c, 0)),   # x chunk
                pl.BlockSpec((Bp, H), lambda c: (0, 0)),        # h0
                pl.BlockSpec((D, H), lambda c: (0, 0)),         # W_ih^T
                pl.BlockSpec((H, H), lambda c: (0, 0)),         # W_hh^T
                pl.BlockSpec((1, H), lambda c: (0, 0)),         # b_ih + b_hh
                pl.BlockSpec((H, O), lambda c: (0, 0)),         # W_fc^T
                pl.BlockSpec((1, O), lambda c: (0, 0)),         # b_fc
            ],
            out_specs=[
                pl.BlockSpec((Tc * Bp, O), lambda c: (c, 0)),   # y chunk
                pl.BlockSpec((Bp, H), lambda c: (0, 0)),        # h carry / h_T
            ],
            scratch_shapes=[
                pltpu.VMEM((Tc * Bp, H), jnp.float32),          # x projection
                pltpu.VMEM((Tc * Bp, H), jnp.float32),          # hidden states
            ]),
        compiler_params=pltpu.CompilerParams(
            dimension_semantics=("arbitrary",)),                # serial h carry
    )(x2d, h0,
      params["w_ih_t"], params["w_hh_t"], params["b_rnn"],
      params["w_fc_t"], params["b_fc"])

    y = jnp.transpose(y2d.reshape(T, Bp, O)[:, :B, :], (1, 0, 2))   # (B, T, O)
    return y, h_out[:B][None]                                       # (1, B, H)


def rnn_forward_ref(x, hidden, params):
    """Plain-JAX reference for verification."""
    def step(h, xt):
        h = jnp.tanh(xt @ params["w_ih_t"] + h @ params["w_hh_t"]
                     + params["b_rnn"])
        return h, h
    h_last, hs = lax.scan(step, hidden[0], jnp.transpose(x, (1, 0, 2)))
    y = jnp.einsum("tbh,ho->tbo", hs, params["w_fc_t"]) + params["b_fc"]
    return jnp.transpose(y, (1, 0, 2)), h_last[None]


def init_params(key):
    """Deterministic init mimicking PyTorch's U(-1/sqrt(H), 1/sqrt(H))."""
    k = 1.0 / jnp.sqrt(jnp.float32(HIDDEN_SIZE))
    ks = jax.random.split(key, 6)
    w_ih = jax.random.uniform(ks[0], (HIDDEN_SIZE, INPUT_SIZE), jnp.float32, -k, k)
    w_hh = jax.random.uniform(ks[1], (HIDDEN_SIZE, HIDDEN_SIZE), jnp.float32, -k, k)
    b_ih = jax.random.uniform(ks[2], (HIDDEN_SIZE,), jnp.float32, -k, k)
    b_hh = jax.random.uniform(ks[3], (HIDDEN_SIZE,), jnp.float32, -k, k)
    # TODO(synk): the original module declares fc = Linear(rnn_size=10, 300),
    # which is shape-incompatible with the 64-dim RNN output (forward would
    # fail in PyTorch); we use the runnable Linear(64, 300) instead.
    w_fc = jax.random.uniform(ks[4], (OUTPUT_SIZE, HIDDEN_SIZE), jnp.float32, -k, k)
    b_fc = jax.random.uniform(ks[5], (OUTPUT_SIZE,), jnp.float32, -k, k)
    return {
        "w_ih_t": w_ih.T,                     # (D, H)
        "w_hh_t": w_hh.T,                     # (H, H)
        "b_rnn": (b_ih + b_hh)[None, :],      # (1, H)
        "w_fc_t": w_fc.T,                     # (H, O)
        "b_fc": b_fc[None, :],                # (1, O)
    }


if __name__ == "__main__":
    key = jax.random.PRNGKey(0)
    kp, kx = jax.random.split(key)
    params = init_params(kp)

    B, T = 2, 8
    x = jax.random.normal(kx, (B, T, INPUT_SIZE), jnp.float32)
    hidden = jnp.zeros((1, B, HIDDEN_SIZE), jnp.float32)   # init_state per batch

    y, h_out = jax.jit(rnn_forward)(x, hidden, params)
    jax.block_until_ready((y, h_out))

    y_ref, h_ref = rnn_forward_ref(x, hidden, params)
    assert y.shape == (B, T, OUTPUT_SIZE) and h_out.shape == (1, B, HIDDEN_SIZE)
    assert jnp.allclose(y, y_ref, atol=1e-4, rtol=1e-4)
    assert jnp.allclose(h_out, h_ref, atol=1e-4, rtol=1e-4)

    print("KERNEL_OK")
</pallas_src>

<mosaic_0001>
module attributes {stable_mosaic.version = 11 : i64} {
  func.func @rnn_fc_kernel(%arg0: i32, %arg1: memref<64x64xf32, #tpu.memory_space<vmem>>, %arg2: memref<8x64xf32, #tpu.memory_space<vmem>>, %arg3: memref<64x64xf32, #tpu.memory_space<vmem>>, %arg4: memref<64x64xf32, #tpu.memory_space<vmem>>, %arg5: memref<1x64xf32, #tpu.memory_space<vmem>>, %arg6: memref<64x300xf32, #tpu.memory_space<vmem>>, %arg7: memref<1x300xf32, #tpu.memory_space<vmem>>, %arg8: memref<64x300xf32, #tpu.memory_space<vmem>>, %arg9: memref<8x64xf32, #tpu.memory_space<vmem>>, %arg10: memref<64x64xf32, #tpu.memory_space<vmem>>, %arg11: memref<64x64xf32, #tpu.memory_space<vmem>>) attributes {dimension_semantics = [#tpu.dimension_semantics<arbitrary>], iteration_bounds = array<i64: 1>, scalar_prefetch = 0 : i64, scratch_operands = 2 : i64, tpu.core_type = #tpu.core_type<tc>, window_params = [{transform_indices = @transform_0, window_bounds = array<i64: 64, 64>}, {pipeline_mode = #tpu.pipeline_mode<synchronous>, transform_indices = @transform_1, window_bounds = array<i64: 8, 64>}, {pipeline_mode = #tpu.pipeline_mode<synchronous>, transform_indices = @transform_2, window_bounds = array<i64: 64, 64>}, {pipeline_mode = #tpu.pipeline_mode<synchronous>, transform_indices = @transform_3, window_bounds = array<i64: 64, 64>}, {pipeline_mode = #tpu.pipeline_mode<synchronous>, transform_indices = @transform_4, window_bounds = array<i64: 1, 64>}, {pipeline_mode = #tpu.pipeline_mode<synchronous>, transform_indices = @transform_5, window_bounds = array<i64: 64, 300>}, {pipeline_mode = #tpu.pipeline_mode<synchronous>, transform_indices = @transform_6, window_bounds = array<i64: 1, 300>}, {transform_indices = @transform_7, window_bounds = array<i64: 64, 300>}, {pipeline_mode = #tpu.pipeline_mode<synchronous>, transform_indices = @transform_8, window_bounds = array<i64: 8, 64>}]} {
    %c0_i32 = arith.constant 0 : i32
    %0 = arith.cmpi eq, %arg0, %c0_i32 : i32
    %1 = arith.extui %0 : i1 to i32
    %c0_i32_0 = arith.constant 0 : i32
    %2 = arith.cmpi ne, %1, %c0_i32_0 : i32
    scf.if %2 {
      %c0_70 = arith.constant 0 : index
      %c0_71 = arith.constant 0 : index
      %99 = vector.load %arg2[%c0_70, %c0_71] : memref<8x64xf32, #tpu.memory_space<vmem>>, vector<8x64xf32>
      %c0_72 = arith.constant 0 : index
      %c0_73 = arith.constant 0 : index
      %100 = vector.load %arg9[%c0_72, %c0_73] : memref<8x64xf32, #tpu.memory_space<vmem>>, vector<8x64xf32>
      tpu.vector_store %arg9[%c0_72, %c0_73], %99 {strides = array<i32>} : memref<8x64xf32, #tpu.memory_space<vmem>>, vector<8x64xf32>,
    } else {
    }
    %c0 = arith.constant 0 : index
    %c0_1 = arith.constant 0 : index
    %3 = vector.load %arg1[%c0, %c0_1] : memref<64x64xf32, #tpu.memory_space<vmem>>, vector<64x64xf32>
    %c0_2 = arith.constant 0 : index
    %c0_3 = arith.constant 0 : index
    %4 = vector.load %arg3[%c0_2, %c0_3] : memref<64x64xf32, #tpu.memory_space<vmem>>, vector<64x64xf32>
    %cst = arith.constant dense<0.000000e+00> : vector<64x64xf32>
    %5 = tpu.matmul %3, %4, %cst {dimension_numbers = #tpu.dot_dimension_numbers<[1], [0], [0], [1], [0, 0, 1, 1], [], []>} : vector<64x64xf32>, vector<64x64xf32>, vector<64x64xf32> -> vector<64x64xf32>
    %c0_4 = arith.constant 0 : index
    %c0_5 = arith.constant 0 : index
    %6 = vector.load %arg5[%c0_4, %c0_5] : memref<1x64xf32, #tpu.memory_space<vmem>>, vector<1x64xf32>
    %7 = vector.broadcast %6 : vector<1x64xf32> to vector<64x64xf32>
    %8 = arith.addf %5, %7 : vector<64x64xf32>
    %c0_6 = arith.constant 0 : index
    %c0_7 = arith.constant 0 : index
    %9 = vector.load %arg10[%c0_6, %c0_7] : memref<64x64xf32, #tpu.memory_space<vmem>>, vector<64x64xf32>
    tpu.vector_store %arg10[%c0_6, %c0_7], %8 {strides = array<i32>} : memref<64x64xf32, #tpu.memory_space<vmem>>, vector<64x64xf32>,
    %c0_8 = arith.constant 0 : index
    %c0_9 = arith.constant 0 : index
    %10 = vector.load %arg9[%c0_8, %c0_9] : memref<8x64xf32, #tpu.memory_space<vmem>>, vector<8x64xf32>
    %c0_i32_10 = arith.constant 0 : i32
    %c8_i32 = arith.constant 8 : i32
    %11 = arith.muli %c0_i32_10, %c8_i32 : i32
    %12 = tpu.assume_multiple %11, 8 : i32
    %13 = arith.index_cast %12 : i32 to index
    %c0_11 = arith.constant 0 : index
    %14 = vector.load %arg10[%13, %c0_11] : memref<64x64xf32, #tpu.memory_space<vmem>>, vector<8x64xf32>
    %c0_12 = arith.constant 0 : index
    %c0_13 = arith.constant 0 : index
    %15 = vector.load %arg4[%c0_12, %c0_13] : memref<64x64xf32, #tpu.memory_space<vmem>>, vector<64x64xf32>
    %cst_14 = arith.constant dense<0.000000e+00> : vector<8x64xf32>
    %16 = tpu.matmul %10, %15, %cst_14 {dimension_numbers = #tpu.dot_dimension_numbers<[1], [0], [0], [1], [0, 0, 1, 1], [], []>} : vector<8x64xf32>, vector<64x64xf32>, vector<8x64xf32> -> vector<8x64xf32>
    %17 = arith.addf %14, %16 : vector<8x64xf32>
    %18 = math.tanh %17 : vector<8x64xf32>
    %19 = arith.index_cast %12 : i32 to index
    %c0_15 = arith.constant 0 : index
    %20 = vector.load %arg11[%19, %c0_15] : memref<64x64xf32, #tpu.memory_space<vmem>>, vector<8x64xf32>
    tpu.vector_store %arg11[%19, %c0_15], %18 {strides = array<i32>} : memref<64x64xf32, #tpu.memory_space<vmem>>, vector<8x64xf32>,
    %c1_i32 = arith.constant 1 : i32
    %c8_i32_16 = arith.constant 8 : i32
    %21 = arith.muli %c1_i32, %c8_i32_16 : i32
    %22 = tpu.assume_multiple %21, 8 : i32
    %23 = arith.index_cast %22 : i32 to index
    %c0_17 = arith.constant 0 : index
    %24 = vector.load %arg10[%23, %c0_17] : memref<64x64xf32, #tpu.memory_space<vmem>>, vector<8x64xf32>
    %c0_18 = arith.constant 0 : index
    %c0_19 = arith.constant 0 : index
    %25 = vector.load %arg4[%c0_18, %c0_19] : memref<64x64xf32, #tpu.memory_space<vmem>>, vector<64x64xf32>
    %cst_20 = arith.constant dense<0.000000e+00> : vector<8x64xf32>
    %26 = tpu.matmul %18, %25, %cst_20 {dimension_numbers = #tpu.dot_dimension_numbers<[1], [0], [0], [1], [0, 0, 1, 1], [], []>} : vector<8x64xf32>, vector<64x64xf32>, vector<8x64xf32> -> vector<8x64xf32>
    %27 = arith.addf %24, %26 : vector<8x64xf32>
    %28 = math.tanh %27 : vector<8x64xf32>
    %29 = arith.index_cast %22 : i32 to index
    %c0_21 = arith.constant 0 : index
    %30 = vector.load %arg11[%29, %c0_21] : memref<64x64xf32, #tpu.memory_space<vmem>>, vector<8x64xf32>
    tpu.vector_store %arg11[%29, %c0_21], %28 {strides = array<i32>} : memref<64x64xf32, #tpu.memory_space<vmem>>, vector<8x64xf32>,
    %c2_i32 = arith.constant 2 : i32
    %c8_i32_22 = arith.constant 8 : i32
    %31 = arith.muli %c2_i32, %c8_i32_22 : i32
    %32 = tpu.assume_multiple %31, 8 : i32
    %33 = arith.index_cast %32 : i32 to index
    %c0_23 = arith.constant 0 : index
    %34 = vector.load %arg10[%33, %c0_23] : memref<64x64xf32, #tpu.memory_space<vmem>>, vector<8x64xf32>
    %c0_24 = arith.constant 0 : index
    %c0_25 = arith.constant 0 : index
    %35 = vector.load %arg4[%c0_24, %c0_25] : memref<64x64xf32, #tpu.memory_space<vmem>>, vector<64x64xf32>
    %cst_26 = arith.constant dense<0.000000e+00> : vector<8x64xf32>
    %36 = tpu.matmul %28, %35, %cst_26 {dimension_numbers = #tpu.dot_dimension_numbers<[1], [0], [0], [1], [0, 0, 1, 1], [], []>} : vector<8x64xf32>, vector<64x64xf32>, vector<8x64xf32> -> vector<8x64xf32>
    %37 = arith.addf %34, %36 : vector<8x64xf32>
    %38 = math.tanh %37 : vector<8x64xf32>
    %39 = arith.index_cast %32 : i32 to index
    %c0_27 = arith.constant 0 : index
    %40 = vector.load %arg11[%39, %c0_27] : memref<64x64xf32, #tpu.memory_space<vmem>>, vector<8x64xf32>
    tpu.vector_store %arg11[%39, %c0_27], %38 {strides = array<i32>} : memref<64x64xf32, #tpu.memory_space<vmem>>, vector<8x64xf32>,
    %c3_i32 = arith.constant 3 : i32
    %c8_i32_28 = arith.constant 8 : i32
    %41 = arith.muli %c3_i32, %c8_i32_28 : i32
    %42 = tpu.assume_multiple %41, 8 : i32
    %43 = arith.index_cast %42 : i32 to index
    %c0_29 = arith.constant 0 : index
    %44 = vector.load %arg10[%43, %c0_29] : memref<64x64xf32, #tpu.memory_space<vmem>>, vector<8x64xf32>
    %c0_30 = arith.constant 0 : index
    %c0_31 = arith.constant 0 : index
    %45 = vector.load %arg4[%c0_30, %c0_31] : memref<64x64xf32, #tpu.memory_space<vmem>>, vector<64x64xf32>
    %cst_32 = arith.constant dense<0.000000e+00> : vector<8x64xf32>
    %46 = tpu.matmul %38, %45, %cst_32 {dimension_numbers = #tpu.dot_dimension_numbers<[1], [0], [0], [1], [0, 0, 1, 1], [], []>} : vector<8x64xf32>, vector<64x64xf32>, vector<8x64xf32> -> vector<8x64xf32>
    %47 = arith.addf %44, %46 : vector<8x64xf32>
    %48 = math.tanh %47 : vector<8x64xf32>
    %49 = arith.index_cast %42 : i32 to index
    %c0_33 = arith.constant 0 : index
    %50 = vector.load %arg11[%49, %c0_33] : memref<64x64xf32, #tpu.memory_space<vmem>>, vector<8x64xf32>
    tpu.vector_store %arg11[%49, %c0_33], %48 {strides = array<i32>} : memref<64x64xf32, #tpu.memory_space<vmem>>, vector<8x64xf32>,
    %c4_i32 = arith.constant 4 : i32
    %c8_i32_34 = arith.constant 8 : i32
    %51 = arith.muli %c4_i32, %c8_i32_34 : i32
    %52 = tpu.assume_multiple %51, 8 : i32
    %53 = arith.index_cast %52 : i32 to index
    %c0_35 = arith.constant 0 : index
    %54 = vector.load %arg10[%53, %c0_35] : memref<64x64xf32, #tpu.memory_space<vmem>>, vector<8x64xf32>
    %c0_36 = arith.constant 0 : index
    %c0_37 = arith.constant 0 : index
    %55 = vector.load %arg4[%c0_36, %c0_37] : memref<64x64xf32, #tpu.memory_space<vmem>>, vector<64x64xf32>
    %cst_38 = arith.constant dense<0.000000e+00> : vector<8x64xf32>
    %56 = tpu.matmul %48, %55, %cst_38 {dimension_numbers = #tpu.dot_dimension_numbers<[1], [0], [0], [1], [0, 0, 1, 1], [], []>} : vector<8x64xf32>, vector<64x64xf32>, vector<8x64xf32> -> vector<8x64xf32>
    %57 = arith.addf %54, %56 : vector<8x64xf32>
    %58 = math.tanh %57 : vector<8x64xf32>
    %59 = arith.index_cast %52 : i32 to index
    %c0_39 = arith.constant 0 : index
    %60 = vector.load %arg11[%59, %c0_39] : memref<64x64xf32, #tpu.memory_space<vmem>>, vector<8x64xf32>
    tpu.vector_store %arg11[%59, %c0_39], %58 {strides = array<i32>} : memref<64x64xf32, #tpu.memory_space<vmem>>, vector<8x64xf32>,
    %c5_i32 = arith.constant 5 : i32
    %c8_i32_40 = arith.constant 8 : i32
    %61 = arith.muli %c5_i32, %c8_i32_40 : i32
    %62 = tpu.assume_multiple %61, 8 : i32
    %63 = arith.index_cast %62 : i32 to index
    %c0_41 = arith.constant 0 : index
    %64 = vector.load %arg10[%63, %c0_41] : memref<64x64xf32, #tpu.memory_space<vmem>>, vector<8x64xf32>
    %c0_42 = arith.constant 0 : index
    %c0_43 = arith.constant 0 : index
    %65 = vector.load %arg4[%c0_42, %c0_43] : memref<64x64xf32, #tpu.memory_space<vmem>>, vector<64x64xf32>
    %cst_44 = arith.constant dense<0.000000e+00> : vector<8x64xf32>
    %66 = tpu.matmul %58, %65, %cst_44 {dimension_numbers = #tpu.dot_dimension_numbers<[1], [0], [0], [1], [0, 0, 1, 1], [], []>} : vector<8x64xf32>, vector<64x64xf32>, vector<8x64xf32> -> vector<8x64xf32>
    %67 = arith.addf %64, %66 : vector<8x64xf32>
    %68 = math.tanh %67 : vector<8x64xf32>
    %69 = arith.index_cast %62 : i32 to index
    %c0_45 = arith.constant 0 : index
    %70 = vector.load %arg11[%69, %c0_45] : memref<64x64xf32, #tpu.memory_space<vmem>>, vector<8x64xf32>
    tpu.vector_store %arg11[%69, %c0_45], %68 {strides = array<i32>} : memref<64x64xf32, #tpu.memory_space<vmem>>, vector<8x64xf32>,
    %c6_i32 = arith.constant 6 : i32
    %c8_i32_46 = arith.constant 8 : i32
    %71 = arith.muli %c6_i32, %c8_i32_46 : i32
    %72 = tpu.assume_multiple %71, 8 : i32
    %73 = arith.index_cast %72 : i32 to index
    %c0_47 = arith.constant 0 : index
    %74 = vector.load %arg10[%73, %c0_47] : memref<64x64xf32, #tpu.memory_space<vmem>>, vector<8x64xf32>
    %c0_48 = arith.constant 0 : index
    %c0_49 = arith.constant 0 : index
    %75 = vector.load %arg4[%c0_48, %c0_49] : memref<64x64xf32, #tpu.memory_space<vmem>>, vector<64x64xf32>
    %cst_50 = arith.constant dense<0.000000e+00> : vector<8x64xf32>
    %76 = tpu.matmul %68, %75, %cst_50 {dimension_numbers = #tpu.dot_dimension_numbers<[1], [0], [0], [1], [0, 0, 1, 1], [], []>} : vector<8x64xf32>, vector<64x64xf32>, vector<8x64xf32> -> vector<8x64xf32>
    %77 = arith.addf %74, %76 : vector<8x64xf32>
    %78 = math.tanh %77 : vector<8x64xf32>
    %79 = arith.index_cast %72 : i32 to index
    %c0_51 = arith.constant 0 : index
    %80 = vector.load %arg11[%79, %c0_51] : memref<64x64xf32, #tpu.memory_space<vmem>>, vector<8x64xf32>
    tpu.vector_store %arg11[%79, %c0_51], %78 {strides = array<i32>} : memref<64x64xf32, #tpu.memory_space<vmem>>, vector<8x64xf32>,
    %c7_i32 = arith.constant 7 : i32
    %c8_i32_52 = arith.constant 8 : i32
    %81 = arith.muli %c7_i32, %c8_i32_52 : i32
    %82 = tpu.assume_multiple %81, 8 : i32
    %83 = arith.index_cast %82 : i32 to index
    %c0_53 = arith.constant 0 : index
    %84 = vector.load %arg10[%83, %c0_53] : memref<64x64xf32, #tpu.memory_space<vmem>>, vector<8x64xf32>
    %c0_54 = arith.constant 0 : index
    %c0_55 = arith.constant 0 : index
    %85 = vector.load %arg4[%c0_54, %c0_55] : memref<64x64xf32, #tpu.memory_space<vmem>>, vector<64x64xf32>
    %cst_56 = arith.constant dense<0.000000e+00> : vector<8x64xf32>
    %86 = tpu.matmul %78, %85, %cst_56 {dimension_numbers = #tpu.dot_dimension_numbers<[1], [0], [0], [1], [0, 0, 1, 1], [], []>} : vector<8x64xf32>, vector<64x64xf32>, vector<8x64xf32> -> vector<8x64xf32>
    %87 = arith.addf %84, %86 : vector<8x64xf32>
    %88 = math.tanh %87 : vector<8x64xf32>
    %89 = arith.index_cast %82 : i32 to index
    %c0_57 = arith.constant 0 : index
    %90 = vector.load %arg11[%89, %c0_57] : memref<64x64xf32, #tpu.memory_space<vmem>>, vector<8x64xf32>
    tpu.vector_store %arg11[%89, %c0_57], %88 {strides = array<i32>} : memref<64x64xf32, #tpu.memory_space<vmem>>, vector<8x64xf32>,
    %c8_i32_58 = arith.constant 8 : i32
    %c0_59 = arith.constant 0 : index
    %c0_60 = arith.constant 0 : index
    %91 = vector.load %arg9[%c0_59, %c0_60] : memref<8x64xf32, #tpu.memory_space<vmem>>, vector<8x64xf32>
    tpu.vector_store %arg9[%c0_59, %c0_60], %88 {strides = array<i32>} : memref<8x64xf32, #tpu.memory_space<vmem>>, vector<8x64xf32>,
    %c0_61 = arith.constant 0 : index
    %c0_62 = arith.constant 0 : index
    %92 = vector.load %arg11[%c0_61, %c0_62] : memref<64x64xf32, #tpu.memory_space<vmem>>, vector<64x64xf32>
    %c0_63 = arith.constant 0 : index
    %c0_64 = arith.constant 0 : index
    %93 = vector.load %arg6[%c0_63, %c0_64] : memref<64x300xf32, #tpu.memory_space<vmem>>, vector<64x300xf32>
    %cst_65 = arith.constant dense<0.000000e+00> : vector<64x300xf32>
    %94 = tpu.matmul %92, %93, %cst_65 {dimension_numbers = #tpu.dot_dimension_numbers<[1], [0], [0], [1], [0, 0, 1, 1], [], []>} : vector<64x64xf32>, vector<64x300xf32>, vector<64x300xf32> -> vector<64x300xf32>
    %c0_66 = arith.constant 0 : index
    %c0_67 = arith.constant 0 : index
    %95 = vector.load %arg7[%c0_66, %c0_67] : memref<1x300xf32, #tpu.memory_space<vmem>>, vector<1x300xf32>
    %96 = vector.broadcast %95 : vector<1x300xf32> to vector<64x300xf32>
    %97 = arith.addf %94, %96 : vector<64x300xf32>
    %c0_68 = arith.constant 0 : index
    %c0_69 = arith.constant 0 : index
    %98 = vector.load %arg8[%c0_68, %c0_69] : memref<64x300xf32, #tpu.memory_space<vmem>>, vector<64x300xf32>
    tpu.vector_store %arg8[%c0_68, %c0_69], %97 {strides = array<i32>} : memref<64x300xf32, #tpu.memory_space<vmem>>, vector<64x300xf32>,
    return
  }
  func.func @transform_0(%arg0: i32) -> (i32, i32) {
    %c0_i32 = arith.constant 0 : i32
    %c0_i32_0 = arith.constant 0 : i32
    return %arg0, %c0_i32 : i32, i32
  }
  func.func @transform_1(%arg0: i32) -> (i32, i32) {
    %c0_i32 = arith.constant 0 : i32
    %c0_i32_0 = arith.constant 0 : i32
    %c0_i32_1 = arith.constant 0 : i32
    return %c0_i32, %c0_i32_0 : i32, i32
  }
  func.func @transform_2(%arg0: i32) -> (i32, i32) {
    %c0_i32 = arith.constant 0 : i32
    %c0_i32_0 = arith.constant 0 : i32
    %c0_i32_1 = arith.constant 0 : i32
    return %c0_i32, %c0_i32_0 : i32, i32
  }
  func.func @transform_3(%arg0: i32) -> (i32, i32) {
    %c0_i32 = arith.constant 0 : i32
    %c0_i32_0 = arith.constant 0 : i32
    %c0_i32_1 = arith.constant 0 : i32
    return %c0_i32, %c0_i32_0 : i32, i32
  }
  func.func @transform_4(%arg0: i32) -> (i32, i32) {
    %c0_i32 = arith.constant 0 : i32
    %c0_i32_0 = arith.constant 0 : i32
    %c0_i32_1 = arith.constant 0 : i32
    return %c0_i32, %c0_i32_0 : i32, i32
  }
  func.func @transform_5(%arg0: i32) -> (i32, i32) {
    %c0_i32 = arith.constant 0 : i32
    %c0_i32_0 = arith.constant 0 : i32
    %c0_i32_1 = arith.constant 0 : i32
    return %c0_i32, %c0_i32_0 : i32, i32
  }
  func.func @transform_6(%arg0: i32) -> (i32, i32) {
    %c0_i32 = arith.constant 0 : i32
    %c0_i32_0 = arith.constant 0 : i32
    %c0_i32_1 = arith.constant 0 : i32
    return %c0_i32, %c0_i32_0 : i32, i32
  }
  func.func @transform_7(%arg0: i32) -> (i32, i32) {
    %c0_i32 = arith.constant 0 : i32
    %c0_i32_0 = arith.constant 0 : i32
    return %arg0, %c0_i32 : i32, i32
  }
  func.func @transform_8(%arg0: i32) -> (i32, i32) {
    %c0_i32 = arith.constant 0 : i32
    %c0_i32_0 = arith.constant 0 : i32
    %c0_i32_1 = arith.constant 0 : i32
    return %c0_i32, %c0_i32_0 : i32, i32
  }
}

</mosaic_0001>

<bundles_post_ra>
// kernel: rnn_forward.1
= control target key start
LH: loop header
LB: loop body
LE: loop exit
PB: predicated region body
PF: predicated region fallthrough
CT: control target
= control target key end

     0   :  { %14 = vsyncpa [#allocation5], 0  ;;  %s1766_s27 = smov [#allocation4]   ;;  %s2195_s0 = inlined_call_operand.vmem [shape: f32[64,64], index: 0, kind: input, shape index: {}]   ;;  %s2196_s1 = inlined_call_operand.vmem [shape: f32[8,64], index: 1, kind: input, shape index: {}]   ;;  %s2197_s2 = inlined_call_operand.vmem [shape: f32[64,64], index: 2, kind: input, shape index: {}]   ;;  %s2198_s3 = inlined_call_operand.vmem [shape: f32[64,64], index: 3, kind: input, shape index: {}]   ;;  %s2199_s4 = inlined_call_operand.vmem [shape: f32[1,64], index: 4, kind: input, shape index: {}]   ;;  %s2200_s5 = inlined_call_operand.hbm [shape: f32[64,300], index: 5, kind: input, shape index: {}]   ;;  %s2201_s6 = inlined_call_operand.vmem [shape: f32[1,300], index: 6, kind: input, shape index: {}]   ;;  %s2202_s7 = inlined_call_operand.vmem [shape: f32[64,300], index: 7, kind: output, shape index: {0}]   ;;  %s2203_s8 = inlined_call_operand.vmem [shape: f32[8,64], index: 8, kind: output, shape index: {1}]  }
   0x1   :  { %s30_s28 = sshll.u32 %s1766_s27, 4  ;;  %s1742_s9 = scalar_lea.hbm %s2200_s5, 3072  ;;  %s31_s28 = int_to_ptr.vmem [resolvable:$true] %s30_s28 }
   0x2   :  { %p1743_p0 = scmp.ne.s32.totalorder %s2200_s5, %s1742_s9  ;;  %p1746_p1 = scmp.lt.u32.totalorder %s1742_s9, %s2200_s5 }
   0x4   :  { %p1748_p2 = pnand %p1746_p1, %p1743_p0 }
   0x6   :  { %1751 = shalt.err (!%p1748_p2)
}
   0x7   :  { %s1752_s14 = scalar_lea.vmem %s31_s28, 3072  ;;  %p1757_p4 = scmp.lt.s32.totalorder %s31_s28, %s31_s28 }
   0x8   :  { %p1753_p3 = scmp.ne.s32.totalorder %s31_s28, %s1752_s14  ;;  %p1758_p5 = scmp.lt.s32.totalorder %s1752_s14, %s1752_s14 }
   0xa   :  { %p1759_p6 = por %p1758_p5, %p1757_p4 }
   0xc   :  { %p1760_p7 = pnand %p1759_p6, %p1753_p3 }
   0xe   :  { %1763 = shalt.err (!%p1760_p7)
}
   0xf   :  { %s1767_s15 = smov 384   ;;  %s1768_s16 = smov 24  }
  0x10   :  { %36 = dma.hbm_to_vmem [thread:$0]  %s2200_s5, 3072, %s31_s28, [#allocation5], %s1767_s15, %s1767_s15, %s1768_s16  }
  0x11   :  { %1764 = dma.done.wait [#allocation5], 3072  }
  0x12   :  { %1765 = vsyncadd [#allocation5], 4294964224  ;;  %v1769_v0 = vmov 0.0|0.0   ;;  %vm1770_vm0 = vmmov 0   ;;  %v1771_v1 = vmov 0.0   ;;  %v57_v2 = vld [vmem:[%s2197_s2] sm:$0xff] }
  0x13   :  { %1592 = vmatprep.subr.bf16.mxu1 %v1769_v0  ;;  %1412 = vmatprep.mubr.msk.f32.mxu1 %vm1770_vm0, %v1771_v1  ;;  %v58_v3 = vld [vmem:[%s2197_s2 + $0x8] sm:$0xff]  ;;  %v59_v4 = vld [vmem:[%s2197_s2 + $0x10] sm:$0xff]  ;;  %v60_v6 = vld [vmem:[%s2197_s2 + $0x18] sm:$0xff]  ;;  %vm47_vm1 = vcmask 523264   ;;  %vm1199_vm2 = vcmask 359424  }
  0x14   :  { %v1576_v5 = vpack.c.bf16 %v58_v3, %v57_v2  ;;  %v61_v7 = vld [vmem:[%s2197_s2 + $0x20] sm:$0xff]  ;;  %v1580_v8 = vpack.c.bf16 %v60_v6, %v59_v4  ;;  %v62_v9 = vld [vmem:[%s2197_s2 + $0x28] sm:$0xff]  ;;  %v214_v14 = vld [vmem:[%s2198_s3 + $0x10] sm:$0xff] }
  0x15   :  { %v212_v10 = vld [vmem:[%s2198_s3] sm:$0xff]  ;;  %v213_v11 = vld [vmem:[%s2198_s3 + $0x8] sm:$0xff]  ;;  %v215_v15 = vld [vmem:[%s2198_s3 + $0x18] sm:$0xff]  ;;  %v1584_v16 = vpack.c.bf16 %v62_v9, %v61_v7 }
  0x16   :  { %1577 = vmatprep.subr.bf16.mxu0 %v1576_v5  ;;  %v1856_v12 = vpack.c.bf16 %v213_v11, %v212_v10  ;;  %v49_v13 = vld [vmem:[%s2195_s0] sm:$0xff]  ;;  %v63_v17 = vld [vmem:[%s2197_s2 + $0x30] sm:$0xff]  ;;  %v64_v18 = vld [vmem:[%s2197_s2 + $0x38] sm:$0xff]  ;;  %v1875_v19 = vpack.c.bf16 %v215_v15, %v214_v14 }
  0x17   :  { %1579 = vmatpush3.bf16.msra.mxu0 %v1576_v5  ;;  %1384 = vmatprep.mubr.msk.f32.mxu0 %vm47_vm1, %v49_v13  ;;  %v216_v20 = vld [vmem:[%s2198_s3 + $0x20] sm:$0xff]  ;;  %v217_v21 = vld [vmem:[%s2198_s3 + $0x28] sm:$0xff]  ;;  %v1588_v23 = vpack.c.bf16 %v64_v18, %v63_v17  ;;  %v218_v25 = vld [vmem:[%s2198_s3 + $0x30] sm:$0xff] }
  0x18   :  { %1581 = vmatprep.subr.bf16.mxu0 %v1580_v8  ;;  %1594 = vmatpush3.bf16.msra.mxu1 %v1856_v12  ;;  %v46_v22 = vld [vmem:[%s2196_s1] sm:$0xff]  ;;  %v1892_v24 = vpack.c.bf16 %v217_v21, %v216_v20  ;;  %v219_v26 = vld [vmem:[%s2198_s3 + $0x38] sm:$0xff]  ;;  %v50_v28 = vld [vmem:[%s2195_s0 + $0x8] sm:$0xff] }
  0x19   :  { %1595 = vmatprep.subr.bf16.mxu1 %v1769_v0  ;;  %48 = vst.msk [vmem:[%s2203_s8] sm:$0xff] %vm47_vm1, %v46_v22  ;;  %v1902_v27 = vpack.c.bf16 %v219_v26, %v218_v25  ;;  %v51_v30 = vld [vmem:[%s2195_s0 + $0x10] sm:$0xff]  ;;  %v52_v31 = vld [vmem:[%s2195_s0 + $0x18] sm:$0xff]  ;;  %v53_v32 = vld [vmem:[%s2195_s0 + $0x20] sm:$0xff] }
  0x1a   :  { %v54_v33 = vld [vmem:[%s2195_s0 + $0x28] sm:$0xff]  ;;  %v55_v34 = vld [vmem:[%s2195_s0 + $0x30] sm:$0xff]  ;;  %v56_v35 = vld [vmem:[%s2195_s0 + $0x38] sm:$0xff] }
  0x1b   :  { %1583 = vmatpush3.bf16.msra.mxu0 %v1580_v8  ;;  %v1231_v36 = vld [vmem:[%s2199_s4] ss:$0 sm:$0xff]  ;;  %v915_v17 = vld [vmem:[#allocation4 + $0x8] sm:$0xff]  ;;  %v917_v26 = vld [vmem:[#allocation4 + $0x18] sm:$0xff] }
  0x1c   :  { %1585 = vmatprep.subr.bf16.mxu0 %v1584_v16  ;;  %1597 = vmatpush3.bf16.msra.mxu1 %v1875_v19  ;;  %v918_v18 = vld [vmem:[#allocation4 + $0x20] sm:$0xff] }
  0x1d   :  { %1598 = vmatprep.subr.bf16.mxu1 %v1769_v0  ;;  %v1688_v20 = vpack.c.bf16 %v918_v18, %v915_v17  ;;  %v914_v25 = vld [vmem:[#allocation4] sm:$0xff] }
  0x1f   :  { %1587 = vmatpush3.bf16.msra.mxu0 %v1584_v16 }
  0x20   :  { %1589 = vmatprep.subr.bf16.mxu0 %v1588_v23  ;;  %1600 = vmatpush3.bf16.msra.mxu1 %v1892_v24  ;;  %v210_v29 = vld [vmem:[%s2203_s8] sm:$0xff] }
  0x21   :  { %1601 = vmatprep.subr.bf16.mxu1 %v1769_v0 }
  0x23   :  { %1591 = vmatpush3.bf16.msra.mxu0 %v1588_v23 }
  0x24   :  { %1603 = vmatpush3.bf16.msra.mxu1 %v1902_v27  ;;  %1604 = vmatprep.subr.bf16.mxu0 %v1769_v0 }
  0x25   :  { %1616 = vmatprep.subr.bf16.mxu1 %v1769_v0 }
  0x26   :  { %1385 = vmatmul.mubr.msk.f32.vlgmr.msra.gmra.mrb[0].mxu0 %vm47_vm1, %v50_v28  ;;  %v924_v28 = vld [vmem:[#allocation4 + $0x50] sm:$0xff] }
  0x27   :  { %1413 = vmatmul.mubr.msk.f32.vlgmr.msra.gmra.mrb[0].mxu1 %vm47_vm1, %v210_v29  ;;  %1606 = vmatpush3.bf16.msra.mxu0 %v1856_v12  ;;  %v1690_v29 = vpack.c.bf16 %v917_v26, %v914_v25 }
  0x28   :  { %1607 = vmatprep.subr.bf16.mxu0 %v1769_v0  ;;  %1618 = vmatpush3.bf16.msra.mxu1 %v1856_v12 }
  0x29   :  { %1619 = vmatprep.subr.bf16.mxu1 %v1769_v0  ;;  %1450 = vmatprep.mubr.msk.f32.mxu1 %vm1770_vm0, %v1771_v1 }
  0x2a   :  { %1387 = vmatprep.mubr.msk.f32.mxu0 %vm47_vm1, %v51_v30 }
  0x2b   :  { %1609 = vmatpush3.bf16.msra.mxu0 %v1875_v19 }
  0x2c   :  { %1610 = vmatprep.subr.bf16.mxu0 %v1769_v0  ;;  %1621 = vmatpush3.bf16.msra.mxu1 %v1875_v19 }
  0x2d   :  { %1622 = vmatprep.subr.bf16.mxu1 %v1769_v0  ;;  %1388 = vmatmul.mubr.msk.f32.gmra.mrb[2].mxu0 %vm47_vm1, %v52_v31  ;;  %v923_v31 = vld [vmem:[#allocation4 + $0x48] sm:$0xff] }
  0x2e   :  { %1390 = vmatprep.mubr.msk.f32.mxu0 %vm47_vm1, %v53_v32  ;;  %v927_v32 = vld [vmem:[#allocation4 + $0x68] sm:$0xff] }
  0x2f   :  { %1612 = vmatpush3.bf16.msra.mxu0 %v1892_v24 }
  0x30   :  { %1613 = vmatprep.subr.bf16.mxu0 %v1769_v0  ;;  %1624 = vmatpush3.bf16.msra.mxu1 %v1892_v24 }
  0x31   :  { %1625 = vmatprep.subr.bf16.mxu1 %v1769_v0  ;;  %1391 = vmatmul.mubr.msk.f32.gmra.mrb[4].mxu0 %vm47_vm1, %v54_v33 }
  0x32   :  { %1393 = vmatprep.mubr.msk.f32.mxu0 %vm47_vm1, %v55_v34 }
  0x33   :  { %1615 = vmatpush3.bf16.msra.mxu0 %v1902_v27 }
  0x34   :  { %1627 = vmatpush3.bf16.msra.mxu1 %v1902_v27  ;;  %1628 = vmatprep.subr.bf16.mxu0 %v1769_v0 }
  0x35   :  { %1640 = vmatprep.subr.bf16.mxu1 %v1769_v0  ;;  %1394 = vmatmul.mubr.msk.f32.gmra.mrb[6].mxu0 %vm47_vm1, %v56_v35  ;;  %v926_v35 = vld [vmem:[#allocation4 + $0x60] sm:$0xff] }
  0x36   :  { %1431 = vmatprep.mubr.msk.f32.mxu0 %vm1770_vm0, %v1771_v1 }
  0xf9   :  { %v1386_v37 = vpop.f32.mrb[0].mxu0 }
  0xfa   :  { %v169_v38 = vadd.f32 %v1386_v37, %v1231_v36  ;;  %v163_v39 = vpop.f32.mrb[1].mxu0  ;;  %v289_v40 = vpop.f32.mrb[0].mxu1  ;;  %v933_v37 = vld [vmem:[#allocation4 + $0x98] sm:$0xff] }
  0xfb   :  { %v164_v41 = vadd.f32 %v1231_v36, %v163_v39  ;;  %v1414_v42 = vpop.f32.mrb[1].mxu1 }
  0xfc   :  { %203 = vst.msk [vmem:[#allocation2 + $0x8] sm:$0xff] %vm47_vm1, %v169_v38  ;;  %v936_v38 = vld [vmem:[#allocation4 + $0xb0] sm:$0xff]  ;;  %v935_v42 = vld [vmem:[#allocation4 + $0xa8] sm:$0xff] }
  0xfd   :  { %202 = vst.msk [vmem:[#allocation2] sm:$0xff] %vm47_vm1, %v164_v41  ;;  %v932_v41 = vld [vmem:[#allocation4 + $0x90] sm:$0xff] }
 0x100   :  { %v1389_v46 = vpop.f32.mrb[2].mxu0 }
 0x101   :  { %v179_v47 = vadd.f32 %v1389_v46, %v1231_v36  ;;  %v173_v48 = vpop.f32.mrb[3].mxu0 }
 0x102   :  { %v174_v49 = vadd.f32 %v1231_v36, %v173_v48 }
 0x103   :  { %205 = vst.msk [vmem:[#allocation2 + $0x18] sm:$0xff] %vm47_vm1, %v179_v47  ;;  %v297_v58 = vld [vmem:[#allocation2 + $0x8] sm:$0xff] }
 0x104   :  { %v211_v43 = vld [vmem:[#allocation2] sm:$0xff]  ;;  %204 = vst.msk [vmem:[#allocation2 + $0x10] sm:$0xff] %vm47_vm1, %v174_v49  ;;  %v1392_v50 = vpop.f32.mrb[4].mxu0 }
 0x105   :  { %v293_v44 = vadd.f32 %v289_v40, %v211_v43  ;;  %v189_v51 = vadd.f32 %v1392_v50, %v1231_v36  ;;  %v183_v52 = vpop.f32.mrb[5].mxu0  ;;  %v1700_v40 = vpack.c.bf16 %v936_v38, %v933_v37  ;;  %v1702_v43 = vpack.c.bf16 %v935_v42, %v932_v41  ;;  %v916_v50 = vld [vmem:[#allocation4 + $0x10] sm:$0xff] }
 0x106   :  { %v184_v53 = vadd.f32 %v1231_v36, %v183_v52 }
 0x107   :  { %1726 = vtanh.f32 %v293_v44  ;;  %207 = vst.msk [vmem:[#allocation2 + $0x28] sm:$0xff] %vm47_vm1, %v189_v51  ;;  %v919_v51 = vld [vmem:[#allocation4 + $0x28] sm:$0xff] }
 0x108   :  { %206 = vst.msk [vmem:[#allocation2 + $0x20] sm:$0xff] %vm47_vm1, %v184_v53  ;;  %v1395_v54 = vpop.f32.mrb[6].mxu0  ;;  %v1704_v52 = vpack.c.bf16 %v919_v51, %v916_v50 }
 0x109   :  { %v199_v55 = vadd.f32 %v1395_v54, %v1231_v36  ;;  %v193_v56 = vpop.f32.mrb[7].mxu0 }
 0x10a   :  { %v194_v57 = vadd.f32 %v1231_v36, %v193_v56  ;;  %v471_v6 = vld [vmem:[#allocation2 + $0x18] sm:$0xff] }
 0x10b   :  { %209 = vst.msk [vmem:[#allocation2 + $0x38] sm:$0xff] %vm47_vm1, %v199_v55  ;;  %v384_v63 = vld [vmem:[#allocation2 + $0x10] sm:$0xff]  ;;  %v929_v36 = vld [vmem:[#allocation4 + $0x78] sm:$0xff] }
 0x10c   :  { %208 = vst.msk [vmem:[#allocation2 + $0x30] sm:$0xff] %vm47_vm1, %v194_v57  ;;  %v1698_v39 = vpack.c.bf16 %v929_v36, %v926_v35  ;;  %v940_v57 = vlaneseq }
 0x10f   :  { %v558_v11 = vld [vmem:[#allocation2 + $0x20] sm:$0xff] }
 0x111   :  { %v1727_v45 = vpop.eup %1726 }
 0x112   :  { %295 = vst.msk [vmem:[#allocation3] sm:$0xff] %vm47_vm1, %v1727_v45  ;;  %1432 = vmatmul.mubr.msk.f32.vlgmr.msra.gmra.mrb[8].mxu0 %vm47_vm1, %v1727_v45  ;;  %v819_v35 = vld [vmem:[#allocation2 + $0x38] sm:$0xff] }
 0x113   :  { %1630 = vmatpush3.bf16.msra.mxu0 %v1856_v12  ;;  %1469 = vmatprep.mubr.msk.f32.mxu0 %vm1770_vm0, %v1771_v1  ;;  %v732_v53 = vld [vmem:[#allocation2 + $0x30] sm:$0xff] }
 0x114   :  { %1631 = vmatprep.subr.bf16.mxu0 %v1769_v0 }
 0x117   :  { %1633 = vmatpush3.bf16.msra.mxu0 %v1875_v19 }
 0x118   :  { %1634 = vmatprep.subr.bf16.mxu0 %v1769_v0 }
 0x119   :  { %v906_v44 = vld [vmem:[#allocation3] sm:$0xff] }
 0x11b   :  { %1636 = vmatpush3.bf16.msra.mxu0 %v1892_v24 }
 0x11c   :  { %1637 = vmatprep.subr.bf16.mxu0 %v1769_v0 }
 0x11f   :  { %1639 = vmatpush3.bf16.msra.mxu0 %v1902_v27 }
 0x120   :  { %1652 = vmatprep.subr.bf16.mxu0 %v1769_v0 }
 0x1e5   :  { %v375_v59 = vpop.f32.mrb[8].mxu0 }
 0x1e6   :  { %v379_v60 = vadd.f32 %v375_v59, %v297_v58  ;;  %v1433_v61 = vpop.f32.mrb[9].mxu0  ;;  %v2059_v58 = vshrl.u32 %v940_v57, 7 }
 0x1e7   :  { %v925_v61 = vld [vmem:[#allocation4 + $0x58] sm:$0xff] }
 0x1e8   :  { %1728 = vtanh.f32 %v379_v60  ;;  %v942_v59 = vsub.s32 0, %v2059_v58  ;;  %v922_v60 = vld [vmem:[#allocation4 + $0x40] sm:$0xff]  ;;  %v950_v42 = vsub.s32 2, %v2059_v58 }
 0x1f2   :  { %v1729_v62 = vpop.eup %1728 }
 0x1f3   :  { %382 = vst.msk [vmem:[#allocation3 + $0x8] sm:$0xff] %vm47_vm1, %v1729_v62  ;;  %1451 = vmatmul.mubr.msk.f32.vlgmr.msra.gmra.mrb[2].mxu1 %vm47_vm1, %v1729_v62  ;;  %v2065_v62 = vld [vmem:[%s2201_s6] sm:$0x7] }
 0x1f4   :  { %1642 = vmatpush3.bf16.msra.mxu1 %v1856_v12  ;;  %1488 = vmatprep.mubr.msk.f32.mxu1 %vm1770_vm0, %v1771_v1 }
 0x1f5   :  { %1643 = vmatprep.subr.bf16.mxu1 %v1769_v0 }
 0x1f8   :  { %1645 = vmatpush3.bf16.msra.mxu1 %v1875_v19 }
 0x1f9   :  { %1646 = vmatprep.subr.bf16.mxu1 %v1769_v0 }
 0x1fa   :  { %v2034_v45 = vld [vmem:[#allocation3 + $0x8] sm:$0xff] }
 0x1fc   :  { %1648 = vmatpush3.bf16.msra.mxu1 %v1892_v24 }
 0x1fd   :  { %1649 = vmatprep.subr.bf16.mxu1 %v1769_v0 }
 0x200   :  { %1651 = vmatpush3.bf16.msra.mxu1 %v1902_v27 }
 0x201   :  { %1664 = vmatprep.subr.bf16.mxu1 %v1769_v0 }
 0x2c6   :  { %v462_v2 = vpop.f32.mrb[2].mxu1 }
 0x2c7   :  { %v466_v3 = vadd.f32 %v462_v2, %v384_v63  ;;  %v1452_v4 = vpop.f32.mrb[3].mxu1  ;;  %v946_v63 = vsub.s32 1, %v2059_v58  ;;  %v1708_v2 = vpack.c.bf16 %v925_v61, %v922_v60 }
 0x2c8   :  { %v2069_v4 = vrot.slane %v2065_v62, %v942_v59 }
 0x2c9   :  { %1730 = vtanh.f32 %v466_v3 }
 0x2d3   :  { %v1731_v5 = vpop.eup %1730 }
 0x2d4   :  { %469 = vst.msk [vmem:[#allocation3 + $0x10] sm:$0xff] %vm47_vm1, %v1731_v5  ;;  %1470 = vmatmul.mubr.msk.f32.vlgmr.msra.gmra.mrb[10].mxu0 %vm47_vm1, %v1731_v5  ;;  %v928_v5 = vld [vmem:[#allocation4 + $0x70] sm:$0xff] }
 0x2d5   :  { %1654 = vmatpush3.bf16.msra.mxu0 %v1856_v12  ;;  %1507 = vmatprep.mubr.msk.f32.mxu0 %vm1770_vm0, %v1771_v1 }
 0x2d6   :  { %1655 = vmatprep.subr.bf16.mxu0 %v1769_v0 }
 0x2d9   :  { %1657 = vmatpush3.bf16.msra.mxu0 %v1875_v19 }
 0x2da   :  { %1658 = vmatprep.subr.bf16.mxu0 %v1769_v0 }
 0x2db   :  { %v2039_v46 = vld [vmem:[#allocation3 + $0x10] sm:$0xff] }
 0x2dd   :  { %1660 = vmatpush3.bf16.msra.mxu0 %v1892_v24 }
 0x2de   :  { %1661 = vmatprep.subr.bf16.mxu0 %v1769_v0 }
 0x2e1   :  { %1663 = vmatpush3.bf16.msra.mxu0 %v1902_v27 }
 0x2e2   :  { %1676 = vmatprep.subr.bf16.mxu0 %v1769_v0 }
 0x3a7   :  { %v549_v7 = vpop.f32.mrb[10].mxu0 }
 0x3a8   :  { %v553_v8 = vadd.f32 %v549_v7, %v471_v6  ;;  %v1471_v9 = vpop.f32.mrb[11].mxu0  ;;  %v931_v6 = vld [vmem:[#allocation4 + $0x88] sm:$0xff]  ;;  %v2074_v7 = vrot.slane %v2065_v62, %v946_v63 }
 0x3a9   :  { %v1712_v9 = vpack.c.bf16 %v931_v6, %v928_v5 }
 0x3aa   :  { %1732 = vtanh.f32 %v553_v8 }
 0x3b4   :  { %v1733_v10 = vpop.eup %1732 }
 0x3b5   :  { %556 = vst.msk [vmem:[#allocation3 + $0x18] sm:$0xff] %vm47_vm1, %v1733_v10  ;;  %1489 = vmatmul.mubr.msk.f32.vlgmr.msra.gmra.mrb[4].mxu1 %vm47_vm1, %v1733_v10 }
 0x3b6   :  { %1666 = vmatpush3.bf16.msra.mxu1 %v1856_v12  ;;  %1526 = vmatprep.mubr.msk.f32.mxu1 %vm1770_vm0, %v1771_v1 }
 0x3b7   :  { %1667 = vmatprep.subr.bf16.mxu1 %v1769_v0 }
 0x3ba   :  { %1669 = vmatpush3.bf16.msra.mxu1 %v1875_v19 }
 0x3bb   :  { %1670 = vmatprep.subr.bf16.mxu1 %v1769_v0 }
 0x3bc   :  { %v2044_v47 = vld [vmem:[#allocation3 + $0x18] sm:$0xff] }
 0x3be   :  { %1672 = vmatpush3.bf16.msra.mxu1 %v1892_v24 }
 0x3bf   :  { %1673 = vmatprep.subr.bf16.mxu1 %v1769_v0 }
 0x3c2   :  { %1675 = vmatpush3.bf16.msra.mxu1 %v1902_v27 }
 0x3c3   :  { %1689 = vmatprep.subr.bf16.mxu1 %v1688_v20 }
 0x488   :  { %v636_v13 = vpop.f32.mrb[4].mxu1 }
 0x489   :  { %v640_v14 = vadd.f32 %v636_v13, %v558_v11  ;;  %v1490_v15 = vpop.f32.mrb[5].mxu1  ;;  %v934_v13 = vld [vmem:[#allocation4 + $0xa0] sm:$0xff] }
 0x48b   :  { %1734 = vtanh.f32 %v640_v14  ;;  %v937_v14 = vld [vmem:[#allocation4 + $0xb8] sm:$0xff] }
 0x48c   :  { %v1716_v17 = vpack.c.bf16 %v937_v14, %v934_v13 }
 0x495   :  { %v1735_v16 = vpop.eup %1734 }
 0x496   :  { %643 = vst.msk [vmem:[#allocation3 + $0x20] sm:$0xff] %vm47_vm1, %v1735_v16  ;;  %1508 = vmatmul.mubr.msk.f32.vlgmr.msra.gmra.mrb[12].mxu0 %vm47_vm1, %v1735_v16 }
 0x497   :  { %1678 = vmatpush3.bf16.msra.mxu0 %v1856_v12  ;;  %1545 = vmatprep.mubr.msk.f32.mxu0 %vm1770_vm0, %v1771_v1  ;;  %v645_v12 = vld [vmem:[#allocation2 + $0x28] sm:$0xff] }
 0x498   :  { %1679 = vmatprep.subr.bf16.mxu0 %v1769_v0 }
 0x49b   :  { %1681 = vmatpush3.bf16.msra.mxu0 %v1875_v19  ;;  %v921_v19 = vld [vmem:[#allocation4 + $0x38] sm:$0xff] }
 0x49c   :  { %1682 = vmatprep.subr.bf16.mxu0 %v1769_v0  ;;  %v1692_v30 = vpack.c.bf16 %v924_v28, %v921_v19 }
 0x49d   :  { %v2049_v48 = vld [vmem:[#allocation3 + $0x20] sm:$0xff] }
 0x49f   :  { %1684 = vmatpush3.bf16.msra.mxu0 %v1892_v24  ;;  %v920_v24 = vld [vmem:[#allocation4 + $0x30] sm:$0xff] }
 0x4a0   :  { %1685 = vmatprep.subr.bf16.mxu0 %v1769_v0  ;;  %v1694_v33 = vpack.c.bf16 %v923_v31, %v920_v24 }
 0x4a3   :  { %1687 = vmatpush3.bf16.msra.mxu0 %v1902_v27  ;;  %v930_v27 = vld [vmem:[#allocation4 + $0x80] sm:$0xff] }
 0x4a4   :  { %v1696_v34 = vpack.c.bf16 %v930_v27, %v927_v32  ;;  %1705 = vmatprep.subr.bf16.mxu0 %v1704_v52 }
 0x569   :  { %v723_v21 = vpop.f32.mrb[12].mxu0 }
 0x56a   :  { %v727_v22 = vadd.f32 %v723_v21, %v645_v12  ;;  %v1509_v23 = vpop.f32.mrb[13].mxu0 }
 0x56c   :  { %1736 = vtanh.f32 %v727_v22 }
 0x576   :  { %v1737_v0 = vpop.eup %1736 }
 0x577   :  { %730 = vst.msk [vmem:[#allocation3 + $0x28] sm:$0xff] %vm47_vm1, %v1737_v0  ;;  %1527 = vmatmul.mubr.msk.f32.vlgmr.msra.gmra.mrb[6].mxu1 %vm47_vm1, %v1737_v0 }
 0x578   :  { %1691 = vmatpush1.bf16.msra.mxu1 %v1690_v29  ;;  %1043 = vmatprep.mubr.f32.mxu1 %v1771_v1 }
 0x579   :  { %1693 = vmatprep.subr.bf16.mxu1 %v1692_v30 }
 0x57c   :  { %1695 = vmatpush1.bf16.msra.mxu1 %v1694_v33 }
 0x57d   :  { %1697 = vmatprep.subr.bf16.mxu1 %v1696_v34 }
 0x57e   :  { %v2054_v49 = vld [vmem:[#allocation3 + $0x28] sm:$0xff] }
 0x580   :  { %1699 = vmatpush1.bf16.msra.mxu1 %v1698_v39 }
 0x581   :  { %1701 = vmatprep.subr.bf16.mxu1 %v1700_v40 }
 0x584   :  { %1703 = vmatpush1.bf16.msra.mxu1 %v1702_v43 }
 0x587   :  { %1248 = vmatmul.mubr.msk.f32.vlgmr.msra.gmra.mrb[8].mxu1 %vm47_vm1, %v906_v44 }
 0x588   :  { %1049 = vmatprep.mubr.f32.mxu1 %v1771_v1 }
 0x58b   :  { %1249 = vmatmul.mubr.msk.f32.gmra.mrb[10].mxu1 %vm47_vm1, %v2034_v45 }
 0x58c   :  { %1055 = vmatprep.mubr.f32.mxu1 %v1771_v1 }
 0x58f   :  { %1250 = vmatmul.mubr.msk.f32.gmra.mrb[12].mxu1 %vm47_vm1, %v2039_v46 }
 0x590   :  { %1061 = vmatprep.mubr.f32.mxu1 %v1771_v1 }
 0x593   :  { %1251 = vmatmul.mubr.msk.f32.gmra.mrb[14].mxu1 %vm47_vm1, %v2044_v47 }
 0x594   :  { %1067 = vmatprep.mubr.f32.mxu1 %v1771_v1 }
 0x597   :  { %1252 = vmatmul.mubr.msk.f32.gmra.mrb[16].mxu1 %vm47_vm1, %v2049_v48 }
 0x598   :  { %1073 = vmatprep.mubr.f32.mxu1 %v1771_v1 }
 0x59b   :  { %1253 = vmatmul.mubr.msk.f32.gmra.mrb[18].mxu1 %vm47_vm1, %v2054_v49 }
 0x59c   :  { %1079 = vmatprep.mubr.f32.mxu1 %v1771_v1 }
 0x64a   :  { %v810_v54 = vpop.f32.mrb[6].mxu1 }
 0x64b   :  { %v814_v55 = vadd.f32 %v810_v54, %v732_v53  ;;  %v1528_v56 = vpop.f32.mrb[7].mxu1 }
 0x64d   :  { %1738 = vtanh.f32 %v814_v55 }
 0x657   :  { %v1739_v3 = vpop.eup %1738 }
 0x658   :  { %817 = vst.msk [vmem:[#allocation3 + $0x30] sm:$0xff] %vm47_vm1, %v1739_v3  ;;  %1546 = vmatmul.mubr.msk.f32.vlgmr.msra.gmra.mrb[14].mxu0 %vm47_vm1, %v1739_v3 }
 0x659   :  { %1707 = vmatpush3.bf16.msra.mxu0 %v1704_v52  ;;  %1564 = vmatprep.mubr.msk.f32.mxu0 %vm47_vm1, %v906_v44 }
 0x65a   :  { %v1045_v8 = vpop.f32.mrb[8].mxu1  ;;  %1709 = vmatprep.subr.bf16.mxu0 %v1708_v2 }
 0x65b   :  { %v1046_v10 = vadd.f32 %v1045_v8, %v2069_v4  ;;  %v1047_v11 = vpop.f32.mrb[9].mxu1 }
 0x65c   :  { %v1048_v15 = vadd.f32 %v1047_v11, %v2074_v7 }
 0x65d   :  { %1197 = vst [vmem:[%s2202_s7] sm:$0xff] %v1046_v10  ;;  %1711 = vmatpush3.bf16.msra.mxu0 %v1708_v2 }
 0x65e   :  { %1198 = vst [vmem:[%s2202_s7 + $0x8] sm:$0xff] %v1048_v15  ;;  %v1051_v16 = vpop.f32.mrb[10].mxu1  ;;  %1713 = vmatprep.subr.bf16.mxu0 %v1712_v9 }
 0x65f   :  { %v1052_v18 = vadd.f32 %v1051_v16, %v2069_v4  ;;  %v1053_v20 = vpop.f32.mrb[11].mxu1  ;;  %v912_v12 = vld [vmem:[#allocation3 + $0x30] sm:$0xff] }
 0x660   :  { %v1054_v21 = vadd.f32 %v1053_v20, %v2074_v7  ;;  %1254 = vmatmul.mubr.msk.f32.gmra.mrb[20].mxu1 %vm47_vm1, %v912_v12 }
 0x661   :  { %1201 = vst [vmem:[%s2202_s7 + $0x18] sm:$0xff] %v1052_v18  ;;  %1715 = vmatpush3.bf16.msra.mxu0 %v1712_v9  ;;  %1085 = vmatprep.mubr.f32.mxu1 %v1771_v1 }
 0x662   :  { %1202 = vst [vmem:[%s2202_s7 + $0x20] sm:$0xff] %v1054_v21  ;;  %v1057_v22 = vpop.f32.mrb[12].mxu1  ;;  %1717 = vmatprep.subr.bf16.mxu0 %v1716_v17 }
 0x663   :  { %v1058_v23 = vadd.f32 %v1057_v22, %v2069_v4  ;;  %v1059_v25 = vpop.f32.mrb[13].mxu1 }
 0x664   :  { %v1060_v26 = vadd.f32 %v1059_v25, %v2074_v7 }
 0x665   :  { %1204 = vst [vmem:[%s2202_s7 + $0x30] sm:$0xff] %v1058_v23  ;;  %1719 = vmatpush3.bf16.msra.mxu0 %v1716_v17 }
 0x666   :  { %1205 = vst [vmem:[%s2202_s7 + $0x38] sm:$0xff] %v1060_v26  ;;  %v1063_v1 = vpop.f32.mrb[14].mxu1 }
 0x667   :  { %v1064_v19 = vadd.f32 %v1063_v1, %v2069_v4  ;;  %v1065_v28 = vpop.f32.mrb[15].mxu1 }
 0x668   :  { %v1066_v29 = vadd.f32 %v1065_v28, %v2074_v7  ;;  %1565 = vmatmul.mubr.msk.f32.vlgmr.msra.gmra.mrb[16].mxu0 %vm47_vm1, %v2034_v45  ;;  %v951_v45 = vrot.slane %v2065_v62, %v950_v42 }
 0x669   :  { %1207 = vst [vmem:[%s2202_s7 + $0x48] sm:$0xff] %v1064_v19  ;;  %1567 = vmatprep.mubr.msk.f32.mxu0 %vm47_vm1, %v2039_v46 }
 0x66a   :  { %1208 = vst [vmem:[%s2202_s7 + $0x50] sm:$0xff] %v1066_v29  ;;  %v1069_v30 = vpop.f32.mrb[16].mxu1 }
 0x66b   :  { %v1070_v24 = vadd.f32 %v1069_v30, %v2069_v4  ;;  %v1071_v31 = vpop.f32.mrb[17].mxu1 }
 0x66c   :  { %v1072_v0 = vadd.f32 %v1071_v31, %v2074_v7  ;;  %1568 = vmatmul.mubr.msk.f32.gmra.mrb[18].mxu0 %vm47_vm1, %v2044_v47 }
 0x66d   :  { %1210 = vst [vmem:[%s2202_s7 + $0x60] sm:$0xff] %v1070_v24  ;;  %1570 = vmatprep.mubr.msk.f32.mxu0 %vm47_vm1, %v2049_v48 }
 0x66e   :  { %1211 = vst [vmem:[%s2202_s7 + $0x68] sm:$0xff] %v1072_v0  ;;  %v1075_v32 = vpop.f32.mrb[18].mxu1 }
 0x66f   :  { %v1076_v27 = vadd.f32 %v1075_v32, %v2069_v4  ;;  %v1077_v33 = vpop.f32.mrb[19].mxu1 }
 0x670   :  { %v1078_v34 = vadd.f32 %v1077_v33, %v2074_v7  ;;  %1571 = vmatmul.mubr.msk.f32.gmra.mrb[20].mxu0 %vm47_vm1, %v2054_v49 }
 0x671   :  { %1213 = vst [vmem:[%s2202_s7 + $0x78] sm:$0xff] %v1076_v27  ;;  %1573 = vmatprep.mubr.msk.f32.mxu0 %vm47_vm1, %v912_v12 }
 0x672   :  { %1214 = vst [vmem:[%s2202_s7 + $0x80] sm:$0xff] %v1078_v34 }
 0x72b   :  { %v897_v36 = vpop.f32.mrb[14].mxu0 }
 0x72c   :  { %v901_v37 = vadd.f32 %v897_v36, %v819_v35  ;;  %v1547_v38 = vpop.f32.mrb[15].mxu0 }
 0x72e   :  { %1740 = vtanh.f32 %v901_v37 }
 0x733   :  { %v1081_v39 = vpop.f32.mrb[20].mxu1 }
 0x734   :  { %v1082_v40 = vadd.f32 %v1081_v39, %v2069_v4  ;;  %v1083_v41 = vpop.f32.mrb[21].mxu1 }
 0x735   :  { %v1084_v43 = vadd.f32 %v1083_v41, %v2074_v7 }
 0x736   :  { %1216 = vst [vmem:[%s2202_s7 + $0x90] sm:$0xff] %v1082_v40 }
 0x737   :  { %1217 = vst [vmem:[%s2202_s7 + $0x98] sm:$0xff] %v1084_v43 }
 0x738   :  { %v1741_v44 = vpop.eup %1740 }
 0x739   :  { %904 = vst.msk [vmem:[#allocation3 + $0x38] sm:$0xff] %vm47_vm1, %v1741_v44  ;;  %905 = vst.msk [vmem:[%s2203_s8] sm:$0xff] %vm47_vm1, %v1741_v44 }
 0x73b   :  { %v1566_v46 = vpop.f32.mrb[16].mxu0 }
 0x73c   :  { %v1164_v47 = vadd.f32 %v1566_v46, %v951_v45  ;;  %v1158_v48 = vpop.f32.mrb[17].mxu0 }
 0x73d   :  { %v1159_v49 = vadd.f32 %v1158_v48, %v951_v45 }
 0x73e   :  { %1203 = vst.msk [vmem:[%s2202_s7 + $0x28] sm:$0xff] %vm1199_vm2, %v1164_v47 }
 0x73f   :  { %1200 = vst.msk [vmem:[%s2202_s7 + $0x10] sm:$0xff] %vm1199_vm2, %v1159_v49  ;;  %v1569_v50 = vpop.f32.mrb[18].mxu0 }
 0x740   :  { %v1174_v51 = vadd.f32 %v1569_v50, %v951_v45  ;;  %v1168_v52 = vpop.f32.mrb[19].mxu0  ;;  %v913_v53 = vld [vmem:[#allocation3 + $0x38] sm:$0xff] }
 0x741   :  { %v1169_v54 = vadd.f32 %v1168_v52, %v951_v45  ;;  %1255 = vmatmul.mubr.msk.f32.gmra.mrb[22].mxu1 %vm47_vm1, %v913_v53  ;;  %1574 = vmatmul.mubr.msk.f32.gmra.mrb[22].mxu0 %vm47_vm1, %v913_v53 }
 0x742   :  { %1209 = vst.msk [vmem:[%s2202_s7 + $0x58] sm:$0xff] %vm1199_vm2, %v1174_v51 }
 0x743   :  { %1206 = vst.msk [vmem:[%s2202_s7 + $0x40] sm:$0xff] %vm1199_vm2, %v1169_v54  ;;  %v1572_v55 = vpop.f32.mrb[20].mxu0 }
 0x744   :  { %v1184_v56 = vadd.f32 %v1572_v55, %v951_v45  ;;  %v1178_v57 = vpop.f32.mrb[21].mxu0 }
 0x745   :  { %v1179_v58 = vadd.f32 %v1178_v57, %v951_v45 }
 0x746   :  { %1215 = vst.msk [vmem:[%s2202_s7 + $0x88] sm:$0xff] %vm1199_vm2, %v1184_v56 }
 0x747   :  { %1212 = vst.msk [vmem:[%s2202_s7 + $0x70] sm:$0xff] %vm1199_vm2, %v1179_v58 }
 0x814   :  { %v1087_v59 = vpop.f32.mrb[22].mxu1  ;;  %v1575_v60 = vpop.f32.mrb[22].mxu0 }
 0x815   :  { %v1088_v61 = vadd.f32 %v1087_v59, %v2069_v4  ;;  %v1194_v62 = vadd.f32 %v1575_v60, %v951_v45  ;;  %v1089_v63 = vpop.f32.mrb[23].mxu1  ;;  %v1188_v2 = vpop.f32.mrb[23].mxu0 }
 0x816   :  { %v1090_v3 = vadd.f32 %v1089_v63, %v2074_v7  ;;  %v1189_v5 = vadd.f32 %v1188_v2, %v951_v45 }
 0x817   :  { %1219 = vst [vmem:[%s2202_s7 + $0xa8] sm:$0xff] %v1088_v61  ;;  %1221 = vst.msk [vmem:[%s2202_s7 + $0xb8] sm:$0xff] %vm1199_vm2, %v1194_v62 }
 0x818   :  { %1220 = vst [vmem:[%s2202_s7 + $0xb0] sm:$0xff] %v1090_v3  ;;  %1218 = vst.msk [vmem:[%s2202_s7 + $0xa0] sm:$0xff] %vm1199_vm2, %v1189_v5 }
 0x819   :  { %1230 = vsyncpa [#allocation5], 1 }

</bundles_post_ra>
